<compile_context>
chip_gen: v5e
topology: v5e:2x2
jax: 0.10.0
libtpu: 0.0.40
codegen_flags: <defaults>
</compile_context>

<pallas_src>
import math
import numpy as np
import jax
import jax.numpy as jnp
from jax.experimental import pallas as pl
from jax.experimental.pallas import tpu as pltpu

N_CLIMATE = 11                  # the -10 fallback row in the torch code has 11 entries
MONTHS_AVAIL = (3, 6, 9, 12)    # months loaded in __init__
FREQ_NUM = 64
MAX_RADIUS = 360.0
MIN_RADIUS = 0.0003
H_RAS, W_RAS = 32, 32           # synthetic raster grid (real CHELSA is ~20880 x 43200)
ENC_DIM = 6 * FREQ_NUM          # 384 = 3 * 128 -> lane aligned
OUT_DIM = N_CLIMATE + ENC_DIM
DEG2RAD = math.pi / 180.0


def _geometric_freqs():
    # Space2Vec / Sphere2Vec geometric frequency schedule (freq_init='geometric').
    log_inc = math.log(MAX_RADIUS / MIN_RADIUS) / (FREQ_NUM - 1)
    timescales = MIN_RADIUS * np.exp(np.arange(FREQ_NUM, dtype=np.float64) * log_inc)
    return (1.0 / timescales).astype(np.float32)  # [FREQ_NUM]


# ---------------------------------------------------------------------------
# Pallas kernel: sphere/grid location encoding only (elementwise hot path)
# ---------------------------------------------------------------------------
def _enc_kernel(locs_ref, freqs_ref, out_ref):
    # locs_ref : (TN, 2)   freqs_ref : (1, 64)   out_ref : (TN, 384)
    lon = locs_ref[:, 0:1] * DEG2RAD                  # (TN, 1)
    lat = locs_ref[:, 1:2] * DEG2RAD                  # (TN, 1)
    freqs = freqs_ref[...]                            # (1, 64)

    lat_f = lat * freqs                               # (TN, 64)
    lon_f = lon * freqs                               # (TN, 64)

    # One full 128-lane vreg per trig call instead of four half-empty ones.
    ang = jnp.concatenate([lat_f, lon_f], axis=-1)    # (TN, 128) = [lat*f | lon*f]
    s = jnp.sin(ang)                                  # [sin_lat | sin_lon]
    c = jnp.cos(ang)                                  # [cos_lat | cos_lon]

    cos_lat = c[:, :FREQ_NUM]                         # (TN, 64)
    prod = jnp.concatenate(
        [cos_lat * c[:, FREQ_NUM:],                   # cos_lat * cos_lon
         cos_lat * s[:, FREQ_NUM:]],                  # cos_lat * sin_lon
        axis=-1)                                      # (TN, 128)

    # Three 128-lane-aligned, unmasked stores (lane-dense output).
    out_ref[:, 0:128] = s
    out_ref[:, 128:256] = c
    out_ref[:, 256:384] = prod


# ---------------------------------------------------------------------------
# Wrapper: raster index arithmetic + gather in XLA, encoding in Pallas
# ---------------------------------------------------------------------------
def chelsa_loc_enc(locs, months, chelsa_flat, freqs, *, tile_n=512):
    n = locs.shape[0]
    lon, lat = locs[:, 0], locs[:, 1]

    # Synthetic geotransform replacing rasterio's ras.index(lon, lat):
    # global grid, row 0 at +90 lat, col 0 at -180 lon, floor() like rasterio.
    row = jnp.floor((90.0 - lat) / (180.0 / H_RAS)).astype(jnp.int32)
    col = jnp.floor((lon + 180.0) / (360.0 / W_RAS)).astype(jnp.int32)
    row = jnp.where(row == H_RAS, H_RAS - 1, row)     # same edge fix as the torch code
    col = jnp.where(col == W_RAS, W_RAS - 1, col)
    valid = (row >= 0) & (row < H_RAS) & (col >= 0) & (col < W_RAS)

    # month -> slot; a month that was never loaded falls back to March (slot 0),
    # mirroring the `except: monthly_arrays[3]` branch.
    midx = jnp.zeros_like(months)
    for slot, m in enumerate(MONTHS_AVAIL):
        midx = jnp.where(months == m, slot, midx)

    flat_idx = (midx * (H_RAS * W_RAS)
                + jnp.clip(row, 0, H_RAS - 1) * W_RAS
                + jnp.clip(col, 0, W_RAS - 1)).astype(jnp.int32)

    # Gather in XLA: append a -10 sentinel row and redirect invalid lookups there,
    # so there is no select and the climate table never enters the kernel.
    table = jnp.concatenate(
        [chelsa_flat, jnp.full((1, N_CLIMATE), -10.0, chelsa_flat.dtype)], axis=0)
    flat_idx = jnp.where(valid, flat_idx, table.shape[0] - 1)
    climate = table[flat_idx].astype(jnp.float32)              # (N, 11)

    # --- location encoding: Pallas kernel, N tiled on a parallel grid axis ---
    tn = min(tile_n, max(8, ((n + 7) // 8) * 8))                # multiple of 8
    n_pad = ((n + tn - 1) // tn) * tn
    locs_p = jnp.zeros((n_pad, 2), jnp.float32).at[:n].set(locs.astype(jnp.float32))

    grid_spec = pltpu.PrefetchScalarGridSpec(
        num_scalar_prefetch=0,
        grid=(n_pad // tn,),
        in_specs=[
            pl.BlockSpec((tn, 2), lambda i: (i, 0)),            # locs tile
            pl.BlockSpec((1, FREQ_NUM), lambda i: (0, 0)),      # freqs (tiny, resident)
        ],
        out_specs=pl.BlockSpec((tn, ENC_DIM), lambda i: (i, 0)),
    )
    enc_raw = pl.pallas_call(
        _enc_kernel,
        out_shape=jax.ShapeDtypeStruct((n_pad, ENC_DIM), jnp.float32),
        grid_spec=grid_spec,
        compiler_params=pltpu.CompilerParams(dimension_semantics=("parallel",)),
    )(locs_p, freqs)[:n]

    # Kernel layout [sin_lat|sin_lon | cos_lat|cos_lon | cl*co|cl*so]
    #   -> canonical term order [sin_lat, cos_lat, sin_lon, cos_lon, cl*co, cl*so].
    # TODO(synk): exact term ordering of the upstream SphereGridSpatialRelationEncoder
    # is not recoverable from the given module; this uses the sphereC+ term set.
    F = FREQ_NUM
    enc = jnp.concatenate(
        [enc_raw[:, 0:F],        # sin(lat*f)
         enc_raw[:, 2 * F:3 * F],  # cos(lat*f)
         enc_raw[:, F:2 * F],    # sin(lon*f)
         enc_raw[:, 3 * F:4 * F],  # cos(lon*f)
         enc_raw[:, 4 * F:6 * F]],  # cos(lat)cos(lon), cos(lat)sin(lon)
        axis=-1)                                                # (N, 384)

    return jnp.concatenate([climate, enc], axis=-1)             # (N, OUT_DIM)


# ---------------------------------------------------------------------------
# Pure-JAX reference (numerical sanity check)
# ---------------------------------------------------------------------------
def _reference(locs, months, chelsa_flat, freqs):
    lon, lat = locs[:, 0], locs[:, 1]
    row = jnp.floor((90.0 - lat) / (180.0 / H_RAS)).astype(jnp.int32)
    col = jnp.floor((lon + 180.0) / (360.0 / W_RAS)).astype(jnp.int32)
    row = jnp.where(row == H_RAS, H_RAS - 1, row)
    col = jnp.where(col == W_RAS, W_RAS - 1, col)
    valid = (row >= 0) & (row < H_RAS) & (col >= 0) & (col < W_RAS)
    midx = jnp.zeros_like(months)
    for slot, m in enumerate(MONTHS_AVAIL):
        midx = jnp.where(months == m, slot, midx)
    ridx = (midx * (H_RAS * W_RAS)
            + jnp.clip(row, 0, H_RAS - 1) * W_RAS
            + jnp.clip(col, 0, W_RAS - 1))
    climate = jnp.where(valid[:, None], chelsa_flat[ridx], -10.0)
    lon_f = (lon[:, None] * DEG2RAD) * freqs
    lat_f = (lat[:, None] * DEG2RAD) * freqs
    sl, cl = jnp.sin(lat_f), jnp.cos(lat_f)
    so, co = jnp.sin(lon_f), jnp.cos(lon_f)
    enc = jnp.concatenate([sl, cl, so, co, cl * co, cl * so], axis=-1)
    return jnp.concatenate([climate, enc], axis=-1)


if __name__ == "__main__":
    key = jax.random.PRNGKey(0)
    n = 8
    k1, k2, k3 = jax.random.split(key, 3)

    lon = jax.random.uniform(k1, (n,), minval=-180.0, maxval=180.0)
    lat = jax.random.uniform(k2, (n,), minval=-90.0, maxval=90.0)
    locs = jnp.stack([lon, lat], axis=1).astype(jnp.float32)
    # one location outside the raster to exercise the -10 fallback row
    locs = locs.at[0].set(jnp.array([200.0, 95.0], jnp.float32))
    # one month (5) that was never loaded -> falls back to March
    months = jnp.array([3, 6, 9, 12, 3, 5, 9, 12], dtype=jnp.int32)

    # Deterministic synthetic CHELSA climatologies: [4 months, 11 vars, H, W],
    # flattened pixel-major / channel-last for the wrapper's row gather.
    chelsa = jax.random.normal(k3, (len(MONTHS_AVAIL), N_CLIMATE, H_RAS, W_RAS),
                               dtype=jnp.float32)
    chelsa_flat = chelsa.transpose(0, 2, 3, 1).reshape(-1, N_CLIMATE)
    freqs = jnp.asarray(_geometric_freqs()).reshape(1, FREQ_NUM)

    out = chelsa_loc_enc(locs, months, chelsa_flat, freqs)
    out = jax.block_until_ready(out)
    assert out.shape == (n, OUT_DIM), out.shape

    ref = _reference(locs, months, chelsa_flat, freqs)
    assert np.allclose(np.asarray(out), np.asarray(ref), rtol=1e-4, atol=1e-4)

    print("KERNEL_OK")
</pallas_src>

<mosaic_0001>
module attributes {stable_mosaic.version = 11 : i64} {
  func.func @_enc_kernel(%arg0: i32, %arg1: memref<8x2xf32, #tpu.memory_space<vmem>>, %arg2: memref<1x64xf32, #tpu.memory_space<vmem>>, %arg3: memref<8x384xf32, #tpu.memory_space<vmem>>) attributes {dimension_semantics = [#tpu.dimension_semantics<parallel>], iteration_bounds = array<i64: 1>, scalar_prefetch = 0 : i64, scratch_operands = 0 : i64, tpu.core_type = #tpu.core_type<tc>, window_params = [{transform_indices = @transform_0, window_bounds = array<i64: 8, 2>}, {pipeline_mode = #tpu.pipeline_mode<synchronous>, transform_indices = @transform_1, window_bounds = array<i64: 1, 64>}, {transform_indices = @transform_2, window_bounds = array<i64: 8, 384>}]} {
    %c0 = arith.constant 0 : index
    %c0_0 = arith.constant 0 : index
    %0 = vector.load %arg1[%c0, %c0_0] : memref<8x2xf32, #tpu.memory_space<vmem>>, vector<8x1xf32>
    %cst = arith.constant 0.0174532924 : f32
    %1 = vector.broadcast %cst : f32 to vector<8x1xf32>
    %2 = arith.mulf %0, %1 : vector<8x1xf32>
    %c0_1 = arith.constant 0 : index
    %c1 = arith.constant 1 : index
    %3 = vector.load %arg1[%c0_1, %c1] : memref<8x2xf32, #tpu.memory_space<vmem>>, vector<8x1xf32>
    %cst_2 = arith.constant 0.0174532924 : f32
    %4 = vector.broadcast %cst_2 : f32 to vector<8x1xf32>
    %5 = arith.mulf %3, %4 : vector<8x1xf32>
    %c0_3 = arith.constant 0 : index
    %c0_4 = arith.constant 0 : index
    %6 = vector.load %arg2[%c0_3, %c0_4] : memref<1x64xf32, #tpu.memory_space<vmem>>, vector<1x64xf32>
    %7 = vector.broadcast %5 : vector<8x1xf32> to vector<8x64xf32>
    %8 = vector.broadcast %6 : vector<1x64xf32> to vector<8x64xf32>
    %9 = arith.mulf %7, %8 : vector<8x64xf32>
    %10 = vector.broadcast %2 : vector<8x1xf32> to vector<8x64xf32>
    %11 = vector.broadcast %6 : vector<1x64xf32> to vector<8x64xf32>
    %12 = arith.mulf %10, %11 : vector<8x64xf32>
    %13 = tpu.concatenate %9, %12 in 1 : vector<8x64xf32>, vector<8x64xf32> -> vector<8x128xf32>
    %14 = math.sin %13 : vector<8x128xf32>
    %15 = math.cos %13 : vector<8x128xf32>
    %16 = vector.extract_strided_slice %15 {offsets = [0, 0], sizes = [8, 64], strides = [1, 1]} : vector<8x128xf32> to vector<8x64xf32>
    %17 = vector.extract_strided_slice %15 {offsets = [0, 64], sizes = [8, 64], strides = [1, 1]} : vector<8x128xf32> to vector<8x64xf32>
    %18 = arith.mulf %16, %17 : vector<8x64xf32>
    %19 = vector.extract_strided_slice %14 {offsets = [0, 64], sizes = [8, 64], strides = [1, 1]} : vector<8x128xf32> to vector<8x64xf32>
    %20 = arith.mulf %16, %19 : vector<8x64xf32>
    %21 = tpu.concatenate %18, %20 in 1 : vector<8x64xf32>, vector<8x64xf32> -> vector<8x128xf32>
    %c0_5 = arith.constant 0 : index
    %c0_6 = arith.constant 0 : index
    %22 = vector.load %arg3[%c0_5, %c0_6] : memref<8x384xf32, #tpu.memory_space<vmem>>, vector<8x128xf32>
    tpu.vector_store %arg3[%c0_5, %c0_6], %14 {strides = array<i32>} : memref<8x384xf32, #tpu.memory_space<vmem>>, vector<8x128xf32>,
    %c0_7 = arith.constant 0 : index
    %c128 = arith.constant 128 : index
    %23 = vector.load %arg3[%c0_7, %c128] : memref<8x384xf32, #tpu.memory_space<vmem>>, vector<8x128xf32>
    tpu.vector_store %arg3[%c0_7, %c128], %15 {strides = array<i32>} : memref<8x384xf32, #tpu.memory_space<vmem>>, vector<8x128xf32>,
    %c0_8 = arith.constant 0 : index
    %c256 = arith.constant 256 : index
    %24 = vector.load %arg3[%c0_8, %c256] : memref<8x384xf32, #tpu.memory_space<vmem>>, vector<8x128xf32>
    tpu.vector_store %arg3[%c0_8, %c256], %21 {strides = array<i32>} : memref<8x384xf32, #tpu.memory_space<vmem>>, vector<8x128xf32>,
    return
  }
  func.func @transform_0(%arg0: i32) -> (i32, i32) {
    %c0_i32 = arith.constant 0 : i32
    %c0_i32_0 = arith.constant 0 : i32
    return %arg0, %c0_i32 : i32, i32
  }
  func.func @transform_1(%arg0: i32) -> (i32, i32) {
    %c0_i32 = arith.constant 0 : i32
    %c0_i32_0 = arith.constant 0 : i32
    %c0_i32_1 = arith.constant 0 : i32
    return %c0_i32, %c0_i32_0 : i32, i32
  }
  func.func @transform_2(%arg0: i32) -> (i32, i32) {
    %c0_i32 = arith.constant 0 : i32
    %c0_i32_0 = arith.constant 0 : i32
    return %arg0, %c0_i32 : i32, i32
  }
}

</mosaic_0001>

<bundles_post_ra>
// kernel: tpu_custom_call.1
= control target key start
LH: loop header
LB: loop body
LE: loop exit
PB: predicated region body
PF: predicated region fallthrough
CT: control target
= control target key end

     0   :  { %v424_v1 = vmov 0   ;;  %s526_s0 = inlined_call_operand.vmem [shape: f32[8,2], index: 0, kind: input, shape index: {}]   ;;  %s527_s1 = inlined_call_operand.vmem [shape: f32[1,64], index: 1, kind: input, shape index: {}]   ;;  %s528_s2 = inlined_call_operand.hbm [shape: f32[8,384], index: 2, kind: output, shape index: {}]  }
   0x1   :  { %v12_v0 = vld [vmem:[%s526_s0] sm:$0xff]  ;;  %394 = vset.pattern.permute.xlu0 %v424_v1 }
   0x2   :  { %v13_v2 = vmul.f32 0.017453292, %v12_v0 }
   0x3   :  { %7 = vsyncpa [#allocation3], 0  ;;  %v425_v3 = vmov 1   ;;  %v397_v4 = vld [vmem:[%s527_s1] ss:$0 sm:$0xff]  ;;  %s426_s13 = smov 64  }
   0x4   :  { %25 = vperm.xlu0 %394, %v13_v2   ;;  %vm33_vm0 = vcmask 523264   ;;  %v427_v22 = vmov 683565275   ;;  %v428_v24 = vmov 2475754826   ;;  %s433_s0 = smov [#allocation2]  }
   0x5   :  { %v429_v27 = vmov 2131351028   ;;  %v430_v30 = vmov 2102212464   ;;  %v431_v33 = vmov 920167782  }
   0x6   :  { %v432_v36 = vmov 1326507024   ;;  %s367_s1 = sshll.u32 %s433_s0, 4  ;;  %s369_s16 = sshll.u32 %s528_s2, 4  ;;  %s368_s1 = int_to_ptr.vmem [resolvable:$true] %s367_s1  ;;  %s370_s16 = int_to_ptr.hbm [resolvable:$true] %s369_s16 }
   0xc   :  { %395 = vset.pattern.permute.xlu0 %v425_v3 }
   0xd   :  { %17 = vperm.xlu0 %395, %v13_v2  }
  0x15   :  { %396 = vset.pattern.permute.xlu0 %v424_v1 }
  0x76   :  { %v26_v5 = vpop.permute.xlu0 %25 }
  0x77   :  { %v28_v6 = vmul.f32 %v397_v4, %v26_v5 }
  0x79   :  { %30 = vrot.lane.b32.xlu1 %v28_v6, %s426_s13 }
  0x7f   :  { %v18_v7 = vpop.permute.xlu0 %17 }
  0x80   :  { %v23_v8 = vmul.f32 %v397_v4, %v18_v7 }
  0xeb   :  { %v31_v9 = vpop.permute.xlu1 %30 }
  0xec   :  { %v459_v10 = vsel %vm33_vm0, %v23_v8, %v31_v9 }
  0xed   :  { %v38_v11 = vand.u32 2139095040, %v459_v10  ;;  %v35_v14 = vand.u32 2147483647, %v459_v10  ;;  %vm37_vm13 = vcmp.lt.s32.totalorder %v459_v10, 0 }
  0xef   :  { %v39_v12 = vshrl.u32 %v38_v11, 23  ;;  %v42_v16 = vand.u32 8388607, %v35_v14  ;;  %vm36_vm14 = vcmp.le.f32.partialorder %v35_v14, 0.7853982 }
  0xf1   :  { %v378_v13 = vadd.s32 4294967169, %v39_v12  ;;  %v43_v20 = vor.u32 8388608, %v42_v16 }
  0xf3   :  { %v45_v15 = vadd.s32 1, %v378_v13  ;;  %v476_v43 = vshll.u32 %v43_v20, 8 }
  0xf5   :  { %vm46_vm1 = vcmp.gt.s32.totalorder %v45_v15, 0  ;;  %v84_v52 = vand.u32 65535, %v476_v43  ;;  %v85_v53 = vshrl.u32 %v476_v43, 16 }
  0xf6   :  { %v47_v17 = vsel %vm46_vm1, %v45_v15, 0 }
  0xf7   :  { %v49_v18 = vand.u32 31, %v47_v17  ;;  %v467_v21 = vshrl.u32 %v47_v17, 5 }
  0xf9   :  { %v465_v19 = vsub.s32 32, %v49_v18  ;;  %v52_v23 = vshll.u32 %v427_v22, %v49_v18  ;;  %v55_v25 = vshll.u32 %v428_v24, %v49_v18  ;;  %v58_v29 = vshll.u32 %v429_v27, %v49_v18 }
  0xfa   :  { %v61_v32 = vshll.u32 %v430_v30, %v49_v18  ;;  %v64_v35 = vshll.u32 %v431_v33, %v49_v18  ;;  %vm67_vm2 = vcmp.lt.s32.totalorder %v467_v21, 1  ;;  %vm70_vm3 = vcmp.lt.s32.totalorder %v467_v21, 4 }
  0xfb   :  { %v53_v26 = vshrl.u32 %v428_v24, %v465_v19  ;;  %v56_v28 = vshrl.u32 %v429_v27, %v465_v19  ;;  %v59_v31 = vshrl.u32 %v430_v30, %v465_v19  ;;  %v62_v34 = vshrl.u32 %v431_v33, %v465_v19 }
  0xfc   :  { %v65_v37 = vshrl.u32 %v432_v36, %v465_v19  ;;  %vm69_vm4 = vcmp.lt.s32.totalorder %v467_v21, 3  ;;  %vm68_vm5 = vcmp.lt.s32.totalorder %v467_v21, 2  ;;  %v51_v17 = vshrl.u32 %v427_v22, %v465_v19 }
  0xfd   :  { %v54_v38 = vor.u32 %v53_v26, %v52_v23  ;;  %v57_v39 = vor.u32 %v56_v28, %v55_v25  ;;  %v60_v40 = vor.u32 %v59_v31, %v58_v29  ;;  %v63_v41 = vor.u32 %v62_v34, %v61_v32 }
  0xfe   :  { %v66_v42 = vor.u32 %v65_v37, %v64_v35 }
  0xff   :  { %v75_v44 = vsel %vm67_vm2, %v54_v38, %v57_v39  ;;  %v79_v45 = vsel %vm67_vm2, %v57_v39, %v60_v40  ;;  %v76_v46 = vsel %vm70_vm3, %v63_v41, 920167782  ;;  %v72_v13 = vsel %vm70_vm3, %v60_v40, 2102212464 }
 0x100   :  { %v80_v47 = vsel %vm70_vm3, %v66_v42, 1326507024  ;;  %v77_v48 = vsel %vm69_vm4, %v60_v40, %v76_v46  ;;  %v71_v26 = vsel %vm67_vm2, %v51_v17, %v54_v38  ;;  %v73_v27 = vsel %vm69_vm4, %v57_v39, %v72_v13 }
 0x101   :  { %v81_v49 = vsel %vm69_vm4, %v63_v41, %v80_v47  ;;  %v78_v50 = vsel %vm68_vm5, %v75_v44, %v77_v48  ;;  %v74_v19 = vsel %vm68_vm5, %v71_v26, %v73_v27 }
 0x102   :  { %v82_v51 = vsel %vm68_vm5, %v79_v45, %v81_v49  ;;  %v108_v56 = vand.u32 65535, %v78_v50  ;;  %v109_v57 = vshrl.u32 %v78_v50, 16  ;;  %v128_v34 = vmul.u32 %v476_v43, %v74_v19 }
 0x103   :  { %v86_v54 = vand.u32 65535, %v82_v51  ;;  %v87_v55 = vshrl.u32 %v82_v51, 16 }
 0x104   :  { %v111_v60 = vmul.u32 %v109_v57, %v84_v52  ;;  %v112_v61 = vmul.u32 %v108_v56, %v85_v53  ;;  %v110_v2 = vmul.u32 %v108_v56, %v84_v52  ;;  %v113_v6 = vmul.u32 %v109_v57, %v85_v53 }
 0x105   :  { %v89_v58 = vmul.u32 %v87_v55, %v84_v52  ;;  %v90_v59 = vmul.u32 %v86_v54, %v85_v53  ;;  %v88_v62 = vmul.u32 %v86_v54, %v84_v52  ;;  %v91_v0 = vmul.u32 %v87_v55, %v85_v53 }
 0x106   :  { %v114_v3 = vshll.u32 %v111_v60, 16  ;;  %v116_v8 = vshll.u32 %v112_v61, 16  ;;  %v115_v24 = vshrl.u32 %v111_v60, 16  ;;  %v117_v30 = vshrl.u32 %v112_v61, 16 }
 0x107   :  { %v92_v63 = vshll.u32 %v89_v58, 16  ;;  %v94_v4 = vshll.u32 %v90_v59, 16  ;;  %v93_v18 = vshrl.u32 %v89_v58, 16  ;;  %v95_v28 = vshrl.u32 %v90_v59, 16 }
 0x108   :  { %vm118_vm7 = vc.u32 %v110_v2, %v114_v3  ;;  %v120_v9 = vadd.s32 %v114_v3, %v110_v2 }
 0x109   :  { %vm96_vm6 = vc.u32 %v88_v62, %v92_v63  ;;  %v98_v5 = vadd.s32 %v92_v63, %v88_v62  ;;  %v119_v12 = vsel %vm118_vm7, 1, %v424_v1 }
 0x10a   :  { %v97_v7 = vsel %vm96_vm6, 1, %v424_v1  ;;  %v121_v16 = vadd.s32 %v119_v12, %v113_v6  ;;  %vm122_vm9 = vc.u32 %v120_v9, %v116_v8  ;;  %v124_v33 = vadd.s32 %v120_v9, %v116_v8 }
 0x10b   :  { %v99_v11 = vadd.s32 %v97_v7, %v91_v0  ;;  %vm100_vm8 = vc.u32 %v98_v5, %v94_v4  ;;  %v123_v23 = vsel %vm122_vm9, 1, %v424_v1  ;;  %vm178_vm6 = vweird.f32 %v459_v10 }
 0x10c   :  { %v101_v15 = vsel %vm100_vm8, 1, %v424_v1  ;;  %v125_v25 = vadd.s32 %v123_v23, %v121_v16 }
 0x10d   :  { %v103_v20 = vadd.s32 %v101_v15, %v99_v11 }
 0x10e   :  { %v126_v31 = vadd.s32 %v125_v25, %v115_v24 }
 0x10f   :  { %v104_v29 = vadd.s32 %v103_v20, %v93_v18 }
 0x110   :  { %v127_v22 = vadd.s32 %v126_v31, %v117_v30 }
 0x111   :  { %v105_v32 = vadd.s32 %v104_v29, %v95_v28 }
 0x112   :  { %v131_v1 = vadd.s32 1, %v127_v22 }
 0x113   :  { %vm130_vm10 = vc.u32 %v105_v32, %v124_v33  ;;  %v129_v21 = vadd.s32 %v124_v33, %v105_v32 }
 0x114   :  { %v132_v35 = vsel %vm130_vm10, %v131_v1, %v127_v22 }
 0x115   :  { %v133_v36 = vadd.s32 %v132_v35, %v128_v34 }
 0x117   :  { %v134_v37 = vadd.s32 536870912, %v133_v36 }
 0x119   :  { %v135_v38 = vshrl.u32 %v134_v37, 30 }
 0x11b   :  { %v136_v40 = vshll.u32 %v135_v38, 30  ;;  %v159_v59 = vsub.s32 4, %v135_v38 }
 0x11d   :  { %v137_v39 = vsub.s32 %v133_v36, %v136_v40  ;;  %v160_v0 = vsel %vm37_vm13, %v159_v59, %v135_v38 }
 0x11e   :  { %v162_v4 = vsel %vm36_vm14, 0, %v160_v0 }
 0x11f   :  { %vm138_vm11 = vcmp.lt.s32.totalorder %v137_v39, 0  ;;  %v139_v41 = vsub.s32 0, %v137_v39  ;;  %v179_v9 = vadd.s32 3, %v162_v4  ;;  %v334_v15 = vand.u32 3, %v162_v4 }
 0x121   :  { %v140_v42 = vsel %vm138_vm11, %v139_v41, %v137_v39  ;;  %v180_v16 = vand.u32 3, %v179_v9  ;;  %vm335_vm15 = vcmp.lt.s32.totalorder %v334_v15, 2  ;;  %vm336_vm1 = vcmp.eq.s32.totalorder %v334_v15, 0 }
 0x122   :  { %v141_v44 = vclz %v140_v42  ;;  %vm339_vm2 = vcmp.eq.s32.totalorder %v334_v15, 2 }
 0x123   :  { %vm181_vm3 = vcmp.lt.s32.totalorder %v180_v16, 2  ;;  %vm182_vm4 = vcmp.eq.s32.totalorder %v180_v16, 0  ;;  %vm185_vm5 = vcmp.eq.s32.totalorder %v180_v16, 2 }
 0x124   :  { %v379_v45 = vadd.s32 4294967294, %v141_v44 }
 0x126   :  { %vm380_vm12 = vcmp.lt.s32.totalorder %v379_v45, 0 }
 0x127   :  { %v144_v46 = vsel %vm380_vm12, 0, %v379_v45 }
 0x128   :  { %v145_v47 = vsub.s32 32, %v144_v46  ;;  %v149_v48 = vsub.s32 4294967266, %v144_v46  ;;  %v146_v49 = vshll.u32 %v137_v39, %v144_v46 }
 0x12a   :  { %v147_v50 = vshrl.u32 %v129_v21, %v145_v47  ;;  %v150_v51 = vadd.s32 127, %v149_v48 }
 0x12c   :  { %v148_v43 = vor.u32 %v147_v50, %v146_v49  ;;  %v151_v52 = vshll.u32 %v150_v51, 23 }
 0x12e   :  { %v152_v53 = vor.u32 4788187, %v151_v52  ;;  %v155_v55 = vcvt.s32.f32 %v148_v43 }
 0x130   :  { %v153_v54 = vand.u32 2147483647, %v152_v53 }
 0x132   :  { %v156_v56 = vmul.f32 %v155_v55, %v153_v54 }
 0x134   :  { %v157_v57 = vxor.u32 2147483648, %v156_v56 }
 0x136   :  { %v158_v58 = vsel %vm37_vm13, %v157_v57, %v156_v56 }
 0x137   :  { %v161_v60 = vsel %vm36_vm14, %v459_v10, %v158_v58 }
 0x138   :  { %v163_v61 = vmul.f32 %v161_v60, %v161_v60 }
 0x13a   :  { %v171_v62 = vmul.f32 -0.00019511016, %v163_v61  ;;  %v164_v63 = vmul.f32 -0.001358992, %v163_v61 }
 0x13c   :  { %v172_v2 = vadd.f32 0.008332121, %v171_v62  ;;  %v165_v3 = vadd.f32 0.041655596, %v164_v63 }
 0x13e   :  { %v173_v5 = vmul.f32 %v172_v2, %v163_v61  ;;  %v166_v6 = vmul.f32 %v165_v3, %v163_v61 }
 0x140   :  { %v174_v7 = vadd.f32 -0.16666654, %v173_v5  ;;  %v167_v8 = vadd.f32 -0.4999988, %v166_v6 }
 0x142   :  { %v175_v11 = vmul.f32 %v174_v7, %v163_v61  ;;  %v168_v12 = vmul.f32 %v167_v8, %v163_v61 }
 0x144   :  { %v176_v13 = vadd.f32 1.0, %v175_v11  ;;  %v169_v14 = vadd.f32 1.0, %v168_v12 }
 0x146   :  { %v177_v17 = vmul.f32 %v176_v13, %v161_v60  ;;  %v186_v18 = vxor.u32 2147483648, %v169_v14 }
 0x148   :  { %v183_v20 = vxor.u32 2147483648, %v177_v17  ;;  %v341_v24 = vsel %vm339_vm2, %v186_v18, %v177_v17  ;;  %v187_v26 = vsel %vm185_vm5, %v186_v18, %v177_v17 }
 0x14a   :  { %v338_v23 = vsel %vm336_vm1, %v169_v14, %v183_v20  ;;  %v184_v25 = vsel %vm182_vm4, %v169_v14, %v183_v20 }
 0x14b   :  { %v342_v27 = vsel %vm335_vm15, %v338_v23, %v341_v24  ;;  %v188_v28 = vsel %vm181_vm3, %v184_v25, %v187_v26 }
 0x14c   :  { %v343_v29 = vsel %vm178_vm6, nan, %v342_v27  ;;  %v189_v30 = vsel %vm178_vm6, nan, %v188_v28 }
 0x14d   :  { %345 = vrot.lane.b32.xlu2 %v343_v29, %s426_s13  ;;  %360 = vst [vmem:[#allocation2 + $0x8] sm:$0xff] %v343_v29  ;;  %350 = vrot.lane.b32.xlu1 %v189_v30, %s426_s13 }
 0x14e   :  { %359 = vst [vmem:[#allocation2] sm:$0xff] %v189_v30 }
 0x1a7   :  { %v346_v33 = vpop.permute.xlu2 %345 }
 0x1a8   :  { %v348_v10 = vmul.f32 %v346_v33, %v343_v29 }
 0x1bf   :  { %v351_v31 = vpop.permute.xlu1 %350 }
 0x1c0   :  { %v353_v32 = vmul.f32 %v351_v31, %v343_v29 }
 0x1c2   :  { %355 = vrot.lane.b32.xlu2 %v353_v32, %s426_s13 }
 0x21c   :  { %v356_v19 = vpop.permute.xlu2 %355 }
 0x21d   :  { %v358_v22 = vsel %vm33_vm0, %v348_v10, %v356_v19 }
 0x21e   :  { %361 = vst [vmem:[#allocation2 + $0x10] sm:$0xff] %v358_v22 }
 0x21f   :  { %372 = dma.vmem_to_hbm [thread:$0]  %s368_s1, 384, %s370_s16, [#allocation3]  }
 0x220   :  { %422 = dma.done.wait [#allocation3], 384  }
 0x221   :  { %423 = vsyncadd [#allocation3], 4294966912 }
 0x222   :  { %377 = vsyncpa [#allocation3], 1 }

</bundles_post_ra>
